<compile_context>
chip_gen: v7x
topology: tpu7x:2x2x1
jax: 0.10.0
libtpu: 0.0.40
codegen_flags: <defaults>
</compile_context>

<pallas_src>
import functools

import numpy as np
import jax
import jax.numpy as jnp
from jax import lax
from jax.experimental import pallas as pl
from jax.experimental.pallas import tpu as pltpu


# ----------------------------- Pallas kernel ----------------------------------
def _rs_kernel(H, W,
               x_ref,
               w1_ref, b1g_ref,
               w2_ref, b2_ref,
               w3_ref, b3_ref,
               wfc_ref, bfc_ref,
               out_ref):
    """One grid step == B_TILE samples.  Channels on sublanes, padded flat spatial on
    lanes.  All BatchNorms are folded into the weights/shifts in the wrapper."""
    Hp, Wp = H + 2, W + 2
    b_tile = x_ref.shape[0]
    n_cls = bfc_ref.shape[1]

    # Weights are tiny and constant across the grid: load once per step.
    w1 = w1_ref[...]          # (Cout, Cin)
    b1g = b1g_ref[...]        # (Cout, Sp)  folded BN shift, zeroed on the pad ring
    w2 = w2_ref[...]          # (Cout, 9*Cout)
    b2 = b2_ref[...]          # (Cout, 1)
    w3 = w3_ref[...]          # (Cout, Cout)
    b3 = b3_ref[...]          # (Cout, 1)
    bfc = bfc_ref[...]        # (1, n_cls)

    for b in range(b_tile):                            # static unroll over the batch tile
        xb = x_ref[b]                                  # (Cin, Sp); pad-ring columns are 0
        # ---- conv1x1 + folded BN + ReLU.  The masked bias keeps the pad ring at exactly
        # zero, which is what the 3x3 conv's padding=1 requires. -----------------------
        y1 = jnp.maximum(jnp.dot(w1, xb, preferred_element_type=jnp.float32) + b1g, 0.0)

        # ---- conv3x3 via im2col in the padded-flat layout: each tap is a static lane
        # shift of y1, taps are stacked on the sublane axis (each exactly one 8-sublane
        # tile) so the concat needs no lane relayout; one K=9*Cout matmul. -------------
        taps = []
        for ky in range(3):
            for kx in range(3):
                d = (ky - 1) * Wp + (kx - 1)           # lane offset of this tap
                taps.append(y1 if d == 0 else jnp.roll(y1, -d, axis=1))
        col = jnp.concatenate(taps, axis=0)            # (9*Cout, Sp)
        # Ring output columns hold garbage; they are ignored downstream (wfc is 0 there).
        y2 = jnp.maximum(jnp.dot(w2, col, preferred_element_type=jnp.float32) + b2, 0.0)

        # ---- conv1x1 #2 + folded BN + ReLU -------------------------------------------
        y3 = jnp.maximum(jnp.dot(w3, y2, preferred_element_type=jnp.float32) + b3, 0.0)

        # ---- fc (2048 -> n_cls): wfc is pre-laid-out as (n_cls, Cout, Sp) with zeros on
        # the pad ring, so this is a lane-dense multiply + lane/sublane reduce and the
        # NCHW flatten never materializes.  Dropout2d is identity in inference. --------
        logit_parts = []
        for k in range(n_cls):                         # n_cls == 2, static unroll
            prod = y3 * wfc_ref[k]                     # (Cout, Sp)
            s = jnp.sum(prod, axis=1, keepdims=True)   # (Cout, 1)  lane reduce
            logit_parts.append(jnp.sum(s, axis=0, keepdims=True))   # (1, 1)
        logits = jnp.concatenate(logit_parts, axis=1) + bfc         # (1, n_cls)
        out_ref[0, b:b + 1, :] = 1.0 / (1.0 + jnp.exp(-logits))


# ----------------------------- wrapper ------------------------------------------
def reliability_selector_forward(x_nchw, fp, *, b_tile=8):
    """x_nchw: (N, Cin, H, W) float32 -> (N, 2) float32 (sigmoid probabilities)."""
    N, Cin, H, W = x_nchw.shape
    n_cls = fp["bfc"].shape[1]
    Hp, Wp = H + 2, W + 2
    Sp = Hp * Wp

    # Keep at least 2 grid steps (so the batch axis can shard across TensorCores on
    # multi-TC parts) while still amortizing per-step overhead for large batches.
    b_tile = max(1, min(b_tile, (N + 1) // 2))
    g = -(-N // b_tile)                 # cdiv
    n_pad = g * b_tile

    # Data prep — NO transpose (native NCHW): zero-pad the tail of the batch and the
    # spatial grid (for the 3x3 conv), then flatten spatial so channels land on sublanes
    # and spatial on lanes inside the kernel.
    xp = jnp.pad(x_nchw, ((0, n_pad - N), (0, 0), (1, 1), (1, 1)))
    xp = xp.reshape(n_pad, Cin, Sp)

    weights = (fp["w1"], fp["b1g"], fp["w2"], fp["b2"],
               fp["w3"], fp["b3"], fp["wfc"], fp["bfc"])

    def _const_spec(a):
        zeros = (0,) * a.ndim
        return pl.BlockSpec(a.shape, lambda n, _z=zeros: _z)

    in_specs = [pl.BlockSpec((b_tile, Cin, Sp), lambda n: (n, 0, 0))] + \
               [_const_spec(a) for a in weights]
    out_specs = pl.BlockSpec((1, b_tile, n_cls), lambda n: (n, 0, 0))

    Cout = fp["w1"].shape[0]
    flops = int(n_pad * Sp * (2 * Cin * Cout          # 1x1 conv (padded grid)
                              + 2 * 9 * Cout * Cout   # 3x3 conv (im2col matmul)
                              + 2 * Cout * Cout       # 1x1 conv #2
                              + 2 * Cout * n_cls))    # fc
    bytes_accessed = int(4 * (int(xp.size) + sum(int(a.size) for a in weights)
                              + n_pad * n_cls))

    out = pl.pallas_call(
        functools.partial(_rs_kernel, H, W),
        out_shape=jax.ShapeDtypeStruct((g, b_tile, n_cls), jnp.float32),
        grid=(g,),
        in_specs=in_specs,
        out_specs=out_specs,
        compiler_params=pltpu.CompilerParams(
            dimension_semantics=("parallel",)),
        cost_estimate=pl.CostEstimate(flops=flops,
                                      transcendentals=int(n_pad * n_cls),
                                      bytes_accessed=bytes_accessed),
    )(xp, *weights)
    return out.reshape(n_pad, n_cls)[:N]


# ----------------------------- parameters ---------------------------------------
def _bn_stats(c, salt):
    """Deterministic synthetic inference-mode BN parameters."""
    idx = jnp.arange(c, dtype=jnp.float32)
    gamma = 1.0 + 0.05 * idx / max(c, 1) + 0.01 * salt
    beta = 0.02 * idx / max(c, 1) - 0.03 * salt
    mean = 0.05 * idx / max(c, 1) + 0.01 * salt
    var = 1.0 + 0.02 * idx / max(c, 1) + 0.005 * salt
    return gamma, beta, mean, var


def make_params(key, cin, cout, fc_in, fc_out):
    ks = jax.random.split(key, 8)
    p = {}
    p["w1"] = 0.3 * jax.random.normal(ks[0], (cout, cin), jnp.float32)
    p["b1c"] = 0.1 * jax.random.normal(ks[1], (cout,), jnp.float32)
    p["w2"] = 0.2 * jax.random.normal(ks[2], (cout, cout, 3, 3), jnp.float32)
    p["b2c"] = 0.1 * jax.random.normal(ks[3], (cout,), jnp.float32)
    p["w3"] = 0.3 * jax.random.normal(ks[4], (cout, cout), jnp.float32)
    p["b3c"] = 0.1 * jax.random.normal(ks[5], (cout,), jnp.float32)
    p["wfc"] = 0.01 * jax.random.normal(ks[6], (fc_out, fc_in), jnp.float32)
    p["bfc"] = 0.1 * jax.random.normal(ks[7], (fc_out,), jnp.float32)
    p["g1"], p["be1"], p["m1"], p["v1"] = _bn_stats(cout, 1.0)
    p["g2"], p["be2"], p["m2"], p["v2"] = _bn_stats(cout, 2.0)
    p["g3"], p["be3"], p["m3"], p["v3"] = _bn_stats(cout, 3.0)
    return p


def fold_params(p, H, W):
    """Fold inference-mode BN into conv weights/shifts; lay weights out for the
    channels-on-sublane / spatial-on-lane kernel (y = W @ X)."""
    def fold(g, be, m, v, bconv):
        s = g / jnp.sqrt(v + 1e-5)
        return s, be + s * (bconv - m)

    s1, sh1 = fold(p["g1"], p["be1"], p["m1"], p["v1"], p["b1c"])
    s2, sh2 = fold(p["g2"], p["be2"], p["m2"], p["v2"], p["b2c"])
    s3, sh3 = fold(p["g3"], p["be3"], p["m3"], p["v3"], p["b3c"])

    cout = p["w1"].shape[0]
    n_cls = p["wfc"].shape[0]
    Hp, Wp = H + 2, W + 2
    Sp = Hp * Wp

    # Interior mask of the padded grid in flat order (zero ring == Conv2d padding=1).
    mask = jnp.zeros((Hp, Wp), jnp.float32).at[1:H + 1, 1:W + 1].set(1.0).reshape(1, Sp)

    fp = {}
    fp["w1"] = s1[:, None] * p["w1"]                                    # (Cout, Cin)
    fp["b1g"] = sh1[:, None] * mask                                     # (Cout, Sp) masked shift
    w2f = s2[:, None, None, None] * p["w2"]                             # (Cout, Cout, 3, 3)
    # tap order (ky, kx, cin) matches the kernel's sublane-stacked im2col.
    fp["w2"] = jnp.transpose(w2f, (0, 2, 3, 1)).reshape(cout, 9 * cout)  # (Cout, 9*Cout)
    fp["b2"] = sh2[:, None]                                             # (Cout, 1)
    fp["w3"] = s3[:, None] * p["w3"]                                    # (Cout, Cout)
    fp["b3"] = sh3[:, None]                                             # (Cout, 1)
    # fc: torch NCHW flatten order (c, h, w) -> (n_cls, Cout, Sp) with the pad ring zeroed.
    wfc = p["wfc"].reshape(n_cls, cout, H, W)
    fp["wfc"] = jnp.pad(wfc, ((0, 0), (0, 0), (1, 1), (1, 1))).reshape(n_cls, cout, Sp)
    fp["bfc"] = p["bfc"].reshape(1, n_cls)
    return {k: v.astype(jnp.float32) for k, v in fp.items()}


# ----------------------------- pure-JAX reference --------------------------------
def reliability_selector_reference(x, p):
    def bn(y, g, b, m, v):
        inv = (g / jnp.sqrt(v + 1e-5))[None, :, None, None]
        return (y - m[None, :, None, None]) * inv + b[None, :, None, None]

    y = jnp.einsum("nchw,oc->nohw", x, p["w1"]) + p["b1c"][None, :, None, None]
    y = jnp.maximum(bn(y, p["g1"], p["be1"], p["m1"], p["v1"]), 0.0)

    y = lax.conv_general_dilated(y, p["w2"], window_strides=(1, 1),
                                 padding=[(1, 1), (1, 1)],
                                 dimension_numbers=("NCHW", "OIHW", "NCHW"))
    y = y + p["b2c"][None, :, None, None]
    y = jnp.maximum(bn(y, p["g2"], p["be2"], p["m2"], p["v2"]), 0.0)

    y = jnp.einsum("nchw,oc->nohw", y, p["w3"]) + p["b3c"][None, :, None, None]
    y = jnp.maximum(bn(y, p["g3"], p["be3"], p["m3"], p["v3"]), 0.0)

    flat = y.reshape(y.shape[0], -1)                 # torch.flatten(x, 1) on NCHW
    logits = flat @ p["wfc"].T + p["bfc"]
    return jax.nn.sigmoid(logits)                    # Dropout2d is identity in eval


# ----------------------------- main ----------------------------------------------
if __name__ == "__main__":
    N, Cin, H, W = 2, 4, 16, 16
    Cout = 8
    FC_IN, FC_OUT = 2048, 2                          # nn.Linear(2048, 2)
    assert Cout * H * W == FC_IN                     # flatten size must match fc input

    key = jax.random.PRNGKey(0)
    kx, kp = jax.random.split(key)
    x = jax.random.normal(kx, (N, Cin, H, W), jnp.float32)

    params = make_params(kp, Cin, Cout, FC_IN, FC_OUT)
    folded = fold_params(params, H, W)

    out = jax.block_until_ready(reliability_selector_forward(x, folded))
    assert out.shape == (N, FC_OUT), out.shape

    ref = reliability_selector_reference(x, params)
    if not np.allclose(np.asarray(out), np.asarray(ref), atol=1e-4, rtol=1e-4):
        raise AssertionError("Pallas ReliabilitySelector output does not match JAX reference")

    print("KERNEL_OK")
</pallas_src>

<mosaic_0001>
module attributes {stable_mosaic.version = 11 : i64} {
  func.func @_rs_kernel(%arg0: i32, %arg1: memref<1x4x324xf32, #tpu.memory_space<vmem>>, %arg2: memref<8x4xf32, #tpu.memory_space<vmem>>, %arg3: memref<8x324xf32, #tpu.memory_space<vmem>>, %arg4: memref<8x72xf32, #tpu.memory_space<vmem>>, %arg5: memref<8x1xf32, #tpu.memory_space<vmem>>, %arg6: memref<8x8xf32, #tpu.memory_space<vmem>>, %arg7: memref<8x1xf32, #tpu.memory_space<vmem>>, %arg8: memref<2x8x324xf32, #tpu.memory_space<vmem>>, %arg9: memref<1x2xf32, #tpu.memory_space<vmem>>, %arg10: memref<1x1x2xf32, #tpu.memory_space<vmem>>) attributes {dimension_semantics = [#tpu.dimension_semantics<parallel>], iteration_bounds = array<i64: 2>, scalar_prefetch = 0 : i64, scratch_operands = 0 : i64, tpu.core_type = #tpu.core_type<tc>, window_params = [{transform_indices = @transform_0, window_bounds = array<i64: 1, 4, 324>}, {pipeline_mode = #tpu.pipeline_mode<synchronous>, transform_indices = @transform_1, window_bounds = array<i64: 8, 4>}, {pipeline_mode = #tpu.pipeline_mode<synchronous>, transform_indices = @transform_2, window_bounds = array<i64: 8, 324>}, {pipeline_mode = #tpu.pipeline_mode<synchronous>, transform_indices = @transform_3, window_bounds = array<i64: 8, 72>}, {pipeline_mode = #tpu.pipeline_mode<synchronous>, transform_indices = @transform_4, window_bounds = array<i64: 8, 1>}, {pipeline_mode = #tpu.pipeline_mode<synchronous>, transform_indices = @transform_5, window_bounds = array<i64: 8, 8>}, {pipeline_mode = #tpu.pipeline_mode<synchronous>, transform_indices = @transform_6, window_bounds = array<i64: 8, 1>}, {pipeline_mode = #tpu.pipeline_mode<synchronous>, transform_indices = @transform_7, window_bounds = array<i64: 2, 8, 324>}, {pipeline_mode = #tpu.pipeline_mode<synchronous>, transform_indices = @transform_8, window_bounds = array<i64: 1, 2>}, {transform_indices = @transform_9, window_bounds = array<i64: 1, 1, 2>}]} {
    %c0 = arith.constant 0 : index
    %c0_0 = arith.constant 0 : index
    %0 = vector.load %arg2[%c0, %c0_0] : memref<8x4xf32, #tpu.memory_space<vmem>>, vector<8x4xf32>
    %c0_1 = arith.constant 0 : index
    %c0_2 = arith.constant 0 : index
    %1 = vector.load %arg3[%c0_1, %c0_2] : memref<8x324xf32, #tpu.memory_space<vmem>>, vector<8x324xf32>
    %c0_3 = arith.constant 0 : index
    %c0_4 = arith.constant 0 : index
    %2 = vector.load %arg4[%c0_3, %c0_4] : memref<8x72xf32, #tpu.memory_space<vmem>>, vector<8x72xf32>
    %c0_5 = arith.constant 0 : index
    %c0_6 = arith.constant 0 : index
    %3 = vector.load %arg5[%c0_5, %c0_6] : memref<8x1xf32, #tpu.memory_space<vmem>>, vector<8x1xf32>
    %c0_7 = arith.constant 0 : index
    %c0_8 = arith.constant 0 : index
    %4 = vector.load %arg6[%c0_7, %c0_8] : memref<8x8xf32, #tpu.memory_space<vmem>>, vector<8x8xf32>
    %c0_9 = arith.constant 0 : index
    %c0_10 = arith.constant 0 : index
    %5 = vector.load %arg7[%c0_9, %c0_10] : memref<8x1xf32, #tpu.memory_space<vmem>>, vector<8x1xf32>
    %c0_11 = arith.constant 0 : index
    %c0_12 = arith.constant 0 : index
    %6 = vector.load %arg9[%c0_11, %c0_12] : memref<1x2xf32, #tpu.memory_space<vmem>>, vector<1x2xf32>
    %c0_13 = arith.constant 0 : index
    %c0_14 = arith.constant 0 : index
    %c0_15 = arith.constant 0 : index
    %7 = vector.load %arg1[%c0_13, %c0_14, %c0_15] : memref<1x4x324xf32, #tpu.memory_space<vmem>>, vector<1x4x324xf32>
    %8 = vector.shape_cast %7 : vector<1x4x324xf32> to vector<4x324xf32>
    %cst = arith.constant dense<0.000000e+00> : vector<8x324xf32>
    %9 = tpu.matmul %0, %8, %cst {dimension_numbers = #tpu.dot_dimension_numbers<[1], [0], [0], [1], [0, 0, 1, 1], [], []>} : vector<8x4xf32>, vector<4x324xf32>, vector<8x324xf32> -> vector<8x324xf32>
    %10 = arith.addf %9, %1 : vector<8x324xf32>
    %cst_16 = arith.constant 0.000000e+00 : f32
    %11 = vector.broadcast %cst_16 : f32 to vector<8x324xf32>
    %12 = arith.maximumf %10, %11 : vector<8x324xf32>
    %13 = vector.extract_strided_slice %12 {offsets = [0, 305], sizes = [8, 19], strides = [1, 1]} : vector<8x324xf32> to vector<8x19xf32>
    %14 = vector.extract_strided_slice %12 {offsets = [0, 0], sizes = [8, 305], strides = [1, 1]} : vector<8x324xf32> to vector<8x305xf32>
    %15 = tpu.concatenate %13, %14 in 1 : vector<8x19xf32>, vector<8x305xf32> -> vector<8x324xf32>
    %16 = vector.extract_strided_slice %12 {offsets = [0, 306], sizes = [8, 18], strides = [1, 1]} : vector<8x324xf32> to vector<8x18xf32>
    %17 = vector.extract_strided_slice %12 {offsets = [0, 0], sizes = [8, 306], strides = [1, 1]} : vector<8x324xf32> to vector<8x306xf32>
    %18 = tpu.concatenate %16, %17 in 1 : vector<8x18xf32>, vector<8x306xf32> -> vector<8x324xf32>
    %19 = vector.extract_strided_slice %12 {offsets = [0, 307], sizes = [8, 17], strides = [1, 1]} : vector<8x324xf32> to vector<8x17xf32>
    %20 = vector.extract_strided_slice %12 {offsets = [0, 0], sizes = [8, 307], strides = [1, 1]} : vector<8x324xf32> to vector<8x307xf32>
    %21 = tpu.concatenate %19, %20 in 1 : vector<8x17xf32>, vector<8x307xf32> -> vector<8x324xf32>
    %22 = vector.extract_strided_slice %12 {offsets = [0, 323], sizes = [8, 1], strides = [1, 1]} : vector<8x324xf32> to vector<8x1xf32>
    %23 = vector.extract_strided_slice %12 {offsets = [0, 0], sizes = [8, 323], strides = [1, 1]} : vector<8x324xf32> to vector<8x323xf32>
    %24 = tpu.concatenate %22, %23 in 1 : vector<8x1xf32>, vector<8x323xf32> -> vector<8x324xf32>
    %25 = vector.extract_strided_slice %12 {offsets = [0, 1], sizes = [8, 323], strides = [1, 1]} : vector<8x324xf32> to vector<8x323xf32>
    %26 = vector.extract_strided_slice %12 {offsets = [0, 0], sizes = [8, 1], strides = [1, 1]} : vector<8x324xf32> to vector<8x1xf32>
    %27 = tpu.concatenate %25, %26 in 1 : vector<8x323xf32>, vector<8x1xf32> -> vector<8x324xf32>
    %28 = vector.extract_strided_slice %12 {offsets = [0, 17], sizes = [8, 307], strides = [1, 1]} : vector<8x324xf32> to vector<8x307xf32>
    %29 = vector.extract_strided_slice %12 {offsets = [0, 0], sizes = [8, 17], strides = [1, 1]} : vector<8x324xf32> to vector<8x17xf32>
    %30 = tpu.concatenate %28, %29 in 1 : vector<8x307xf32>, vector<8x17xf32> -> vector<8x324xf32>
    %31 = vector.extract_strided_slice %12 {offsets = [0, 18], sizes = [8, 306], strides = [1, 1]} : vector<8x324xf32> to vector<8x306xf32>
    %32 = vector.extract_strided_slice %12 {offsets = [0, 0], sizes = [8, 18], strides = [1, 1]} : vector<8x324xf32> to vector<8x18xf32>
    %33 = tpu.concatenate %31, %32 in 1 : vector<8x306xf32>, vector<8x18xf32> -> vector<8x324xf32>
    %34 = vector.extract_strided_slice %12 {offsets = [0, 19], sizes = [8, 305], strides = [1, 1]} : vector<8x324xf32> to vector<8x305xf32>
    %35 = vector.extract_strided_slice %12 {offsets = [0, 0], sizes = [8, 19], strides = [1, 1]} : vector<8x324xf32> to vector<8x19xf32>
    %36 = tpu.concatenate %34, %35 in 1 : vector<8x305xf32>, vector<8x19xf32> -> vector<8x324xf32>
    %37 = tpu.concatenate %15, %18, %21, %24, %12, %27, %30, %33, %36 in 0 : vector<8x324xf32>, vector<8x324xf32>, vector<8x324xf32>, vector<8x324xf32>, vector<8x324xf32>, vector<8x324xf32>, vector<8x324xf32>, vector<8x324xf32>, vector<8x324xf32> -> vector<72x324xf32>
    %cst_17 = arith.constant dense<0.000000e+00> : vector<8x324xf32>
    %38 = tpu.matmul %2, %37, %cst_17 {dimension_numbers = #tpu.dot_dimension_numbers<[1], [0], [0], [1], [0, 0, 1, 1], [], []>} : vector<8x72xf32>, vector<72x324xf32>, vector<8x324xf32> -> vector<8x324xf32>
    %39 = vector.broadcast %3 : vector<8x1xf32> to vector<8x324xf32>
    %40 = arith.addf %38, %39 : vector<8x324xf32>
    %cst_18 = arith.constant 0.000000e+00 : f32
    %41 = vector.broadcast %cst_18 : f32 to vector<8x324xf32>
    %42 = arith.maximumf %40, %41 : vector<8x324xf32>
    %cst_19 = arith.constant dense<0.000000e+00> : vector<8x324xf32>
    %43 = tpu.matmul %4, %42, %cst_19 {dimension_numbers = #tpu.dot_dimension_numbers<[1], [0], [0], [1], [0, 0, 1, 1], [], []>} : vector<8x8xf32>, vector<8x324xf32>, vector<8x324xf32> -> vector<8x324xf32>
    %44 = vector.broadcast %5 : vector<8x1xf32> to vector<8x324xf32>
    %45 = arith.addf %43, %44 : vector<8x324xf32>
    %cst_20 = arith.constant 0.000000e+00 : f32
    %46 = vector.broadcast %cst_20 : f32 to vector<8x324xf32>
    %47 = arith.maximumf %45, %46 : vector<8x324xf32>
    %c0_21 = arith.constant 0 : index
    %c0_22 = arith.constant 0 : index
    %c0_23 = arith.constant 0 : index
    %48 = vector.load %arg8[%c0_21, %c0_22, %c0_23] : memref<2x8x324xf32, #tpu.memory_space<vmem>>, vector<1x8x324xf32>
    %49 = vector.shape_cast %48 : vector<1x8x324xf32> to vector<8x324xf32>
    %50 = arith.mulf %47, %49 : vector<8x324xf32>
    %cst_24 = arith.constant dense<0.000000e+00> : vector<8xf32>
    %51 = vector.multi_reduction <add>, %50, %cst_24 [1] : vector<8x324xf32> to vector<8xf32>
    %52 = vector.shape_cast %51 : vector<8xf32> to vector<8x1xf32>
    %cst_25 = arith.constant dense<0.000000e+00> : vector<1xf32>
    %53 = vector.multi_reduction <add>, %52, %cst_25 [0] : vector<8x1xf32> to vector<1xf32>
    %54 = vector.shape_cast %53 : vector<1xf32> to vector<1x1xf32>
    %c1 = arith.constant 1 : index
    %c0_26 = arith.constant 0 : index
    %c0_27 = arith.constant 0 : index
    %55 = vector.load %arg8[%c1, %c0_26, %c0_27] : memref<2x8x324xf32, #tpu.memory_space<vmem>>, vector<1x8x324xf32>
    %56 = vector.shape_cast %55 : vector<1x8x324xf32> to vector<8x324xf32>
    %57 = arith.mulf %47, %56 : vector<8x324xf32>
    %cst_28 = arith.constant dense<0.000000e+00> : vector<8xf32>
    %58 = vector.multi_reduction <add>, %57, %cst_28 [1] : vector<8x324xf32> to vector<8xf32>
    %59 = vector.shape_cast %58 : vector<8xf32> to vector<8x1xf32>
    %cst_29 = arith.constant dense<0.000000e+00> : vector<1xf32>
    %60 = vector.multi_reduction <add>, %59, %cst_29 [0] : vector<8x1xf32> to vector<1xf32>
    %61 = vector.shape_cast %60 : vector<1xf32> to vector<1x1xf32>
    %62 = tpu.concatenate %54, %61 in 1 : vector<1x1xf32>, vector<1x1xf32> -> vector<1x2xf32>
    %63 = arith.addf %62, %6 : vector<1x2xf32>
    %cst_30 = arith.constant 0.000000e+00 : f32
    %64 = vector.broadcast %cst_30 : f32 to vector<1x2xf32>
    %65 = arith.subf %64, %63 : vector<1x2xf32>
    %66 = math.exp %65 : vector<1x2xf32>
    %cst_31 = arith.constant 1.000000e+00 : f32
    %67 = vector.broadcast %cst_31 : f32 to vector<1x2xf32>
    %68 = arith.addf %67, %66 : vector<1x2xf32>
    %cst_32 = arith.constant 1.000000e+00 : f32
    %69 = vector.broadcast %cst_32 : f32 to vector<1x2xf32>
    %70 = arith.divf %69, %68 : vector<1x2xf32>
    %c0_33 = arith.constant 0 : index
    %c0_34 = arith.constant 0 : index
    %c0_35 = arith.constant 0 : index
    %71 = vector.load %arg10[%c0_33, %c0_34, %c0_35] : memref<1x1x2xf32, #tpu.memory_space<vmem>>, vector<1x1x2xf32>
    %72 = vector.shape_cast %71 : vector<1x1x2xf32> to vector<1x2xf32>
    %73 = vector.shape_cast %70 : vector<1x2xf32> to vector<1x1x2xf32>
    tpu.vector_store %arg10[%c0_33, %c0_34, %c0_35], %73 {strides = array<i32>} : memref<1x1x2xf32, #tpu.memory_space<vmem>>, vector<1x1x2xf32>,
    return
  }
  func.func @transform_0(%arg0: i32) -> (i32, i32, i32) {
    %c0_i32 = arith.constant 0 : i32
    %c0_i32_0 = arith.constant 0 : i32
    %c0_i32_1 = arith.constant 0 : i32
    return %arg0, %c0_i32, %c0_i32_0 : i32, i32, i32
  }
  func.func @transform_1(%arg0: i32) -> (i32, i32) {
    %c0_i32 = arith.constant 0 : i32
    %c0_i32_0 = arith.constant 0 : i32
    %c0_i32_1 = arith.constant 0 : i32
    return %c0_i32, %c0_i32_0 : i32, i32
  }
  func.func @transform_2(%arg0: i32) -> (i32, i32) {
    %c0_i32 = arith.constant 0 : i32
    %c0_i32_0 = arith.constant 0 : i32
    %c0_i32_1 = arith.constant 0 : i32
    return %c0_i32, %c0_i32_0 : i32, i32
  }
  func.func @transform_3(%arg0: i32) -> (i32, i32) {
    %c0_i32 = arith.constant 0 : i32
    %c0_i32_0 = arith.constant 0 : i32
    %c0_i32_1 = arith.constant 0 : i32
    return %c0_i32, %c0_i32_0 : i32, i32
  }
  func.func @transform_4(%arg0: i32) -> (i32, i32) {
    %c0_i32 = arith.constant 0 : i32
    %c0_i32_0 = arith.constant 0 : i32
    %c0_i32_1 = arith.constant 0 : i32
    return %c0_i32, %c0_i32_0 : i32, i32
  }
  func.func @transform_5(%arg0: i32) -> (i32, i32) {
    %c0_i32 = arith.constant 0 : i32
    %c0_i32_0 = arith.constant 0 : i32
    %c0_i32_1 = arith.constant 0 : i32
    return %c0_i32, %c0_i32_0 : i32, i32
  }
  func.func @transform_6(%arg0: i32) -> (i32, i32) {
    %c0_i32 = arith.constant 0 : i32
    %c0_i32_0 = arith.constant 0 : i32
    %c0_i32_1 = arith.constant 0 : i32
    return %c0_i32, %c0_i32_0 : i32, i32
  }
  func.func @transform_7(%arg0: i32) -> (i32, i32, i32) {
    %c0_i32 = arith.constant 0 : i32
    %c0_i32_0 = arith.constant 0 : i32
    %c0_i32_1 = arith.constant 0 : i32
    %c0_i32_2 = arith.constant 0 : i32
    return %c0_i32, %c0_i32_0, %c0_i32_1 : i32, i32, i32
  }
  func.func @transform_8(%arg0: i32) -> (i32, i32) {
    %c0_i32 = arith.constant 0 : i32
    %c0_i32_0 = arith.constant 0 : i32
    %c0_i32_1 = arith.constant 0 : i32
    return %c0_i32, %c0_i32_0 : i32, i32
  }
  func.func @transform_9(%arg0: i32) -> (i32, i32, i32) {
    %c0_i32 = arith.constant 0 : i32
    %c0_i32_0 = arith.constant 0 : i32
    %c0_i32_1 = arith.constant 0 : i32
    return %arg0, %c0_i32, %c0_i32_0 : i32, i32, i32
  }
}

</mosaic_0001>

<bundles_post_ra>
// kernel: tpu_custom_call.1
= control target key start
LH: loop header
LB: loop body
LE: loop exit
PB: predicated region body
PF: predicated region fallthrough
CT: control target
= control target key end

     0   :  { %s1911_s0 = inlined_call_operand.hbm [shape: f32[2,4,324], index: 0, kind: input, shape index: {}]   ;;  %s1912_s1 = inlined_call_operand.vmem [shape: f32[8,4], index: 1, kind: input, shape index: {}]   ;;  %s1913_s2 = inlined_call_operand.hbm [shape: f32[8,324], index: 2, kind: input, shape index: {}]   ;;  %s1914_s3 = inlined_call_operand.vmem [shape: f32[8,72], index: 3, kind: input, shape index: {}]   ;;  %s1915_s4 = inlined_call_operand.vmem [shape: f32[8,1], index: 4, kind: input, shape index: {}]   ;;  %s1916_s5 = inlined_call_operand.hbm [shape: f32[8,8], index: 5, kind: input, shape index: {}]   ;;  %s1917_s6 = inlined_call_operand.vmem [shape: f32[8,1], index: 6, kind: input, shape index: {}]   ;;  %s1918_s7 = inlined_call_operand.vmem [shape: f32[2,8,324], index: 7, kind: input, shape index: {}]   ;;  %s1919_s8 = inlined_call_operand.vmem [shape: f32[1,2], index: 8, kind: input, shape index: {}]   ;;  %s1920_s9 = inlined_call_operand.hbm [shape: f32[2,1,2], index: 9, kind: output, shape index: {}]  }
   0x1   :  { %1924 = sst [smem:[#allocation13_spill]] %s1913_s2 }
   0x2   :  { %1925 = sst [smem:[#allocation14_spill]] %s1916_s5 }
   0x3   :  { %14 = vsyncpa [#allocation3], 0 }
   0x4   :  { %16 = vsyncpa [#allocation3 + $0x1], 0 }
   0x5   :  { %17 = vsyncpa [#allocation6], 0 }
   0x6   :  { %18 = vsyncpa [#allocation4], 0 }
   0x7   :  { %20 = vsyncpa [#allocation4 + $0x1], 0  ;;  %s1588_s30 = smov 0   ;;  %s1590_s10 = smov 0  }
   0x8   :  { %s1592_s11 = smov 0   ;;  %s1594_s12 = smov 0  }
   0x9 LB: > { %s1609_s13 = sadd.s32 4294967295, %s1512_s12   ;;  %s1127_s14 = sadd.s32 4294967294, %s1512_s12   ;;  %s1512_s12 = sphi %s1594_s12, %s1947_s12   ;;  %s1508_s11 = sphi %s1592_s11, %s1946_s11   ;;  %s1504_s10 = sphi %s1590_s10, %s1945_s10   ;;  %s1500_s30 = sphi %s1588_s30, %s1944_s30  }
   0xa   : > { %p46_p0 = scmp.ne.s32.totalorder %s1504_s10, %s1500_s30  ;;  %p1921_p1 = scmp.eq.s32.totalorder %s1609_s13, 0 }
   0xb   : > { %p244_p3 = scmp.eq.s32.totalorder %s1127_s14, 1  ;;  %p1128_p5 = scmp.ge.s32.totalorder %s1512_s12, 1 }
   0xc   : > { %p1618_p4 = por %p1921_p1, %p46_p0  ;;  %p251_p7 = scmp.lt.s32.totalorder %s1512_s12, 3 }
   0xd   : > { %p1623_p6 = por %p244_p3, %p46_p0  ;;  %s1514_s18 = smov [#allocation5]  }
   0xe   : > { %s1926_s15 = scalar_select %p1618_p4, 1, 0 }
   0xf   : > { %s1927_s16 = scalar_select %p1623_p6, 1, 0 }
  0x10   : > { %p1628_p8 = pnand %p1128_p5, %p251_p7  ;;  %s267_s19 = sshll.u32 %s1514_s18, 4  ;;  %s268_s19 = int_to_ptr.vmem [resolvable:$true] %s267_s19 }
  0x11   : > { %s1515_s20 = smov [#allocation7]   ;;  %s1644_s23 = sadd.s32 1, %s1512_s12  }
  0x12   : > { %s1928_s17 = scalar_select %p1628_p8, 1, 0 }
  0x13   : > { %p1239_p10 = pneg %p1628_p8  ;;  %s284_s21 = sshll.u32 %s1515_s20, 4  ;;  %s1641_s21 = int_to_ptr.vmem [resolvable:$true] %s284_s21 }
  0x14   : > { %s1930_s2 = sld [smem:[#allocation13_spill]] }
  0x15   : > { %p1637_p11 = pnand %p1239_p10, %p1921_p1 }
  0x17   : > { %p1358_p13 = pneg %p1637_p11 }
  0x1a   : > { %s1356_s27 = scalar_lea.hbm %s1930_s2, 384 }
  0x1b   : > { %p1357_p12 = scmp.ne.s32.totalorder %s1930_s2, %s1356_s27  ;;  %p1363_p5 = scmp.lt.u32.totalorder %s1356_s27, %s1930_s2 }
  0x1d   : > { %p1359_p0 = pnand %p1358_p13, %p1357_p12 }
  0x1f   : > { %p1360_p3 = pneg %p1359_p0 }
  0x21   : > { %p1365_p7 = pnand %p1363_p5, %p1360_p3 }
  0x23   : > { %1368 = shalt.err (!%p1365_p7)
}
  0x24   : > { %s1369_s20 = scalar_lea.vmem %s268_s19, 384  ;;  %p1377_p2 = scmp.lt.s32.totalorder %s268_s19, %s268_s19 }
  0x25   : > { %p1370_p10 = scmp.ne.s32.totalorder %s268_s19, %s1369_s20  ;;  %p1378_p6 = scmp.lt.s32.totalorder %s1369_s20, %s1369_s20 }
  0x27   : > { %p1372_p9 = pnand %p1370_p10, %p1358_p13  ;;  %p1379_p4 = por %p1378_p6, %p1377_p2 }
  0x29   : > { %p1373_p1 = pneg %p1372_p9 }
  0x2b   : > { %p1380_p8 = pnand %p1379_p4, %p1373_p1 }
  0x2d   : > { %1383 = shalt.err (!%p1380_p8)
}
  0x2e   : > { %1242 = dma.hbm_to_vmem [thread:$0]  (!%p1637_p11), %s1930_s2, 384, %s268_s19, [#allocation6]  }
  0x2f   : > { %s1931_s5 = sld [smem:[#allocation14_spill]] }
  0x35   : > { %s1384_s29 = scalar_lea.hbm %s1931_s5, 128 }
  0x36   : > { %p1385_p9 = scmp.ne.s32.totalorder %s1931_s5, %s1384_s29  ;;  %p1391_p4 = scmp.lt.u32.totalorder %s1384_s29, %s1931_s5 }
  0x38   : > { %p1387_p2 = pnand %p1385_p9, %p1358_p13 }
  0x3a   : > { %p1388_p1 = pneg %p1387_p2 }
  0x3c   : > { %p1393_p6 = pnand %p1391_p4, %p1388_p1 }
  0x3e   : > { %1396 = shalt.err (!%p1393_p6)
}
  0x3f   : > { %s1397_s19 = scalar_lea.vmem %s1641_s21, 128  ;;  %p1405_p3 = scmp.lt.s32.totalorder %s1641_s21, %s1641_s21 }
  0x40   : > { %p1398_p8 = scmp.ne.s32.totalorder %s1641_s21, %s1397_s19  ;;  %p1406_p5 = scmp.lt.s32.totalorder %s1397_s19, %s1397_s19 }
  0x42   : > { %p1400_p12 = pnand %p1398_p8, %p1358_p13  ;;  %p1407_p7 = por %p1406_p5, %p1405_p3 }
  0x44   : > { %p1401_p0 = pneg %p1400_p12 }
  0x46   : > { %p1408_p10 = pnand %p1407_p7, %p1401_p0 }
  0x48   : > { %1411 = shalt.err (!%p1408_p10)
}
  0x49   : > { %1245 = dma.hbm_to_vmem [thread:$0]  (!%p1637_p11), %s1931_s5, 128, %s1641_s21, [#allocation6]  }
  0x4a   : > { %s1932_s26 = ssub.s32 %s1512_s12, %s1644_s23  ;;  %s33_s27 = sadd.s32 1, %s1508_s11 }
  0x4b   : > { %p31_p13 = scmp.eq.s32.totalorder %s1932_s26, 0  ;;  %p40_p9 = scmp.ne.s32.totalorder %s1508_s11, %s1504_s10 }
  0x4c   : > { %p41_p2 = scmp.eq.s32.totalorder %s1512_s12, 0  ;;  %p1934_p4 = scmp.eq.s32.totalorder %s1609_s13, 1 }
  0x4d   : > { %s1703_s22 = scalar_select %p31_p13, %s1508_s11, %s33_s27  }
  0x4e   : > { %p42_p1 = por %p41_p2, %p40_p9  ;;  %p1707_p6 = por %p1934_p4, %p40_p9 }
  0x4f   : > { %1933 = sst [smem:[#allocation12_spill]] %s1703_s22  ;;  %p1256_p8 = scmp.lt.s32.totalorder %s1512_s12, 2 }
  0x50   : > { %s304_s29 = sand.u32 1, %s1508_s11   ;;  %s1225_s18 = smul.u32 192, %s1512_s12 }
  0x51   : > { %s1224_s14 = smul.u32 12, %s304_s29  ;;  %p1714_p12 = pnand %p1256_p8, %p42_p1 }
  0x52   : > { %s1721_s24 = scalar_lea.hbm %s1911_s0, %s1225_s18  ;;  %s305_s27 = scalar_lea.sflag [#allocation3], %s304_s29 }
  0x53   : > { %s308_s25 = scalar_lea.vmem [#allocation2], %s1224_s14  ;;  %s1412_s2 = scalar_lea.hbm %s1721_s24, 192 }
  0x54   : > { %s316_s26 = sshll.u32 %s308_s25, 4  ;;  %p1413_p11 = scmp.ne.s32.totalorder %s1721_s24, %s1412_s2  ;;  %s1723_s26 = int_to_ptr.vmem [resolvable:$true] %s316_s26 }
  0x55   : > { %p1414_p0 = pneg %p1714_p12  ;;  %s1417_s19 = scalar_lea.hbm %s1911_s0, 384 }
  0x56   : > { %p1418_p7 = scmp.lt.u32.totalorder %s1721_s24, %s1911_s0  ;;  %p1419_p10 = scmp.lt.u32.totalorder %s1417_s19, %s1412_s2 }
  0x57   : > { %p1415_p3 = pnand %p1414_p0, %p1413_p11  ;;  %p1421_p9 = scmp.lt.u32.totalorder %s1412_s2, %s1721_s24 }
  0x58   : > { %p1420_p13 = por %p1419_p10, %p1418_p7 }
  0x59   : > { %p1416_p5 = pneg %p1415_p3 }
  0x5a   : > { %p1422_p2 = por %p1421_p9, %p1420_p13 }
  0x5c   : > { %p1423_p1 = pnand %p1422_p2, %p1416_p5 }
  0x5e   : > { %1426 = shalt.err (!%p1423_p1)
}
  0x5f   : > { %s1427_s29 = scalar_lea.vmem %s1723_s26, 192  ;;  %s1516_s14 = smov [#allocation2]  }
  0x60   : > { %p1428_p4 = scmp.ne.s32.totalorder %s1723_s26, %s1427_s29  ;;  %s1432_s25 = sshll.u32 %s1516_s14, 4  ;;  %s1433_s25 = int_to_ptr.vmem [resolvable:$false] %s1432_s25 }
  0x61   : > { %s1434_s5 = scalar_lea.vmem %s1433_s25, 384  ;;  %p1435_p3 = scmp.lt.s32.totalorder %s1723_s26, %s1433_s25 }
  0x62   : > { %p1430_p8 = pnand %p1428_p4, %p1414_p0  ;;  %p1436_p7 = scmp.lt.s32.totalorder %s1434_s5, %s1427_s29 }
  0x64   : > { %p1431_p11 = pneg %p1430_p8  ;;  %p1437_p10 = por %p1436_p7, %p1435_p3 }
  0x66   : > { %p1438_p13 = pnand %p1437_p10, %p1431_p11 }
  0x68   : > { %1441 = shalt.err (!%p1438_p13)
}
  0x69   : > { %1249 = dma.hbm_to_vmem [thread:$0]  (!%p1714_p12), %s1721_s24, 192, %s1723_s26, %s305_s27  }
  0x6a   : > { %p1937_p5 = scmp.ne.s32.totalorder %s1928_s17, 0 }
  0x6b   : > { %s1753_s2 = sand.u32 (!%p1937_p5), 1, %s1504_s10   ;;  %p1938_p0 = scmp.ne.s32.totalorder (!%p1937_p5), %s1926_s15, 0 }
  0x6c   : > { %325 = sbr.rel (%p1937_p5) target bundleno = 1142 (0x476), region = 56  ;;  %s328_s21 = scalar_lea.sflag (!%p1937_p5), [#allocation3], %s1753_s2 }
  0x6d   : > { %s1226_s22 = smul.u32 (!%p1937_p5), 12, %s1753_s2 }
  0x6f   : > { %s331_s18 = scalar_lea.vmem (!%p1937_p5), [#allocation2], %s1226_s22 }
  0x73   : > { %1487 = dma.done.wait (%p1938_p0), %s328_s21, 192  }
  0x74   : > { %1489 = vsyncadd (%p1938_p0), %s328_s21, 4294967104  ;;  %p1939_p9 = scmp.eq.s32.totalorder %s1609_s13, 0 }
  0x76   : > { %1491 = dma.done.wait (%p1939_p9), [#allocation6], 512   ;;  %p1940_p12 = pmov %p1939_p9 }
  0x77   : > { %v1517_v0 = vmov 0.0   ;;  %vm1518_vm0 = vmmov 0   ;;  %vm391_vm1 = vcmask 1043456   ;;  %vm387_vm2 = vcmask 31744   ;;  %v383_v1 = vld [vmem:[%s331_s18 + $0x8] sm:$0xf] }
  0x78   : > { %1493 = vsyncadd (%p1940_p12), [#allocation6], 4294966784  ;;  %1165 = vmatprep.subr.mxu1 %v1517_v0  ;;  %1167 = vmatprep.mubr.msk.f32.mxu1 %vm1518_vm0, %v1517_v0  ;;  %v373_v2 = vld [vmem:[%s1912_s1] sm:$0xff]  ;;  %v376_v5 = vld [vmem:[#allocation5 + $0x10] sm:$0xff]  ;;  %s1519_s20 = smov 19   ;;  %s1520_s24 = smov 79  }
  0x79   : > { %462 = vmatprep.mubr.f32.mxu0 %v1517_v0  ;;  %v382_v3 = vld [vmem:[%s331_s18] sm:$0xff]  ;;  %1166 = vmatpush3.msk.msra.mxu1 %vm391_vm1, %v383_v1  ;;  %v374_v12 = vld [vmem:[#allocation5] sm:$0xff]  ;;  %s1521_s26 = smov 77   ;;  %s1522_s27 = smov 78   ;;  %v1529_v18 = vmov 0.0|0.0   ;;  %v1533_v21 = vmov 0  }
  0x7a   : > { %v386_v4 = vcombine.high %v382_v3, %v382_v3  ;;  %1168 = vmatmul.mubr.msk.f32.vlgmr.msra.gmra.mrb[0].mxu1 %vm387_vm2, %v373_v2  ;;  %s1523_s19 = smov 1   ;;  %s1524_s29 = smov 18   ;;  %v375_v15 = vld [vmem:[#allocation5 + $0x8] sm:$0xff]  ;;  %1212 = vmatprep.subr.bf16.mxu1 %v1529_v18  ;;  %vm554_vm3 = vcmask 154624   ;;  %vm570_vm4 = vcmask 146432   ;;  %vm586_vm5 = vcmask 138240  }
  0x7b   : > { %1188 = vmatprep.mubr.msk.f32.mxu1 %vm1518_vm0, %v1517_v0  ;;  %s1525_s14 = smov 61   ;;  %s1526_s25 = smov 67   ;;  %1349 = vset.pattern.permute.xlu1 %v1533_v21  ;;  %v378_v22 = vld [vmem:[%s1915_s4] sm:$0xff]  ;;  %vm602_vm6 = vcmask 7168   ;;  %vm615_vm7 = vcmask 1039360   ;;  %vm624_vm8 = vcmask 547840  }
  0x7c   : > { %1136 = vmatprep.subr.msk.mxu0 %vm391_vm1, %v386_v4  ;;  %s1527_s5 = smov 17   ;;  %s1528_s22 = smov 110   ;;  %1350 = vset.pattern.permute.xlu0 %v1533_v21  ;;  %vm632_vm9 = vcmask 908288   ;;  %vm649_vm10 = vcmask 900096   ;;  %vm641_vm11 = vcmask 416768   ;;  %vm658_vm12 = vcmask 408576  }
  0x7d   : > { %1137 = vmatpush1.msk.msra.mxu0 %vm391_vm1, %v382_v3  ;;  %s1530_s21 = smov 127   ;;  %s1531_s18 = smov 111   ;;  %vm666_vm13 = vcmask 891904   ;;  %vm675_vm14 = vcmask 400384   ;;  %vm682_vm15 = vcmask 588800   ;;  %vm835_vm1 = vcmask 64512  }
  0x7e   : > { %1138 = vmatmul.mubr.msk.f32.vlgmr.msra.gmra.mrb[0].mxu0 %vm387_vm2, %v373_v2  ;;  %s1532_s15 = smov 51   ;;  %s1534_s17 = smov 50   ;;  %vm1027_vm2 = vcmask 8192  }
  0x7f   : > { %750 = vmatprep.mubr.f32.mxu0 %v1517_v0 }
 0x14d   : > { %v535_v6 = vpop.f32.mrb[0].mxu1 }
 0x14e   : > { %v536_v7 = vadd.f32 %v535_v6, %v376_v5  ;;  %v1169_v8 = vpop.f32.mrb[1].mxu1 }
 0x150   : > { %v1775_v9 = vmax.f32 %v536_v7, 0.0 }
 0x151   : > { %v464_v10 = vpop.f32.mrb[0].mxu0 }
 0x152   : > { %v466_v11 = vpop.f32.mrb[1].mxu0  ;;  %552 = vrot.lane.b32.xlu0 %v1775_v9, %s1519_s20  ;;  %543 = vrot.lane.b32.xlu1 %v1775_v9, %s1520_s24  ;;  %v465_v13 = vadd.f32 %v464_v10, %v374_v12 }
 0x153   : > { %v467_v16 = vadd.f32 %v466_v11, %v375_v15 }
 0x154   : > { %v1781_v14 = vmax.f32 %v465_v13, 0.0 }
 0x155   : > { %v1787_v17 = vmax.f32 %v467_v16, 0.0 }
 0x156   : > { %577 = vrot.lane.b32.xlu0 %v1775_v9, %s1521_s26  ;;  %561 = vrot.lane.b32.xlu1 %v1775_v9, %s1522_s27  ;;  %s1536_s27 = smov 49  }
 0x157   : > { %v1314_v19 = vpack.i.bf16 %v1787_v17, %v1781_v14  ;;  %v1334_v20 = vpack.i.bf16 %v1775_v9, %v1787_v17 }
 0x15a   : > { %600 = vrot.lane.b32.xlu0 %v1775_v9, %s1523_s19  ;;  %568 = vrot.lane.b32.xlu1 %v1775_v9, %s1524_s29 }
 0x15e   : > { %593 = vrot.lane.b32.xlu1 %v1775_v9, %s1525_s14  ;;  %621 = vrot.lane.b32.xlu0 %v1781_v14, %s1526_s25 }
 0x162   : > { %584 = vrot.lane.b32.xlu1 %v1775_v9, %s1527_s5  ;;  %643 = vrot.lane.b32.xlu0 %v1781_v14, %s1528_s22 }
 0x166   : > { %1315 = vrot.lane.b32.xlu0 %v1314_v19, %s1519_s20  ;;  %609 = vrot.lane.b32.xlu1 %v1781_v14, %s1530_s21  ;;  %s1535_s20 = smov 109  }
 0x16a   : > { %1320 = vrot.lane.b32.xlu0 %v1314_v19, %s1524_s29  ;;  %626 = vrot.lane.b32.xlu1 %v1781_v14, %s1531_s18 }
 0x16e   : > { %1325 = vrot.lane.b32.xlu0 %v1314_v19, %s1527_s5  ;;  %1330 = vrot.lane.b32.xlu1 %v1314_v19, %s1523_s19  ;;  %s1148_s5 = sshll.u32 %s1609_s13, 4  ;;  %s1537_s13 = smov [#allocation8]  }
 0x16f   : > { %s1446_s26 = sshll.u32 %s1537_s13, 4  ;;  %s1447_s26 = int_to_ptr.vmem [resolvable:$false] %s1446_s26 }
 0x172   : > { %1335 = vrot.lane.b32.xlu0 %v1334_v20, %s1530_s21  ;;  %638 = vrot.lane.b32.xlu1 %v1781_v14, %s1532_s15 }
 0x176   : > { %1340 = vrot.lane.b32.xlu0 %v1334_v20, %s1531_s18  ;;  %1345 = vrot.lane.b32.xlu1 %v1334_v20, %s1528_s22  ;;  %s372_s22 = scalar_lea.vmem [#allocation8], %s1753_s2 }
 0x177   : > { %s1042_s21 = sshll.u32 %s372_s22, 4  ;;  %s1869_s21 = int_to_ptr.vmem [resolvable:$true] %s1042_s21 }
 0x178   : > { %s1442_s24 = scalar_lea.vmem %s1869_s21, 16  ;;  %p1449_p8 = scmp.lt.s32.totalorder %s1869_s21, %s1447_s26 }
 0x179   : > { %p1443_p2 = scmp.ne.s32.totalorder %s1869_s21, %s1442_s24 }
 0x17a   : > { %655 = vrot.lane.b32.xlu0 %v1781_v14, %s1534_s17  ;;  %662 = vrot.lane.b32.xlu1 %v1787_v17, %s1535_s20  ;;  %s1867_s17 = scalar_lea.hbm %s1920_s9, %s1148_s5 }
 0x17b   : > { %p1444_p1 = pnand %p1443_p2, %p1707_p6 }
 0x17d   : > { %p1445_p4 = pneg %p1444_p1 }
 0x17e   : > { %664 = vrot.lane.b32.xlu0 %v1775_v9, %s1535_s20  ;;  %660 = vrot.lane.b32.xlu1 %v1781_v14, %s1535_s20  ;;  %s1030_s20 = scalar_lea.sflag [#allocation4], %s1753_s2 }
 0x182   : > { %672 = vrot.lane.b32.xlu0 %v1781_v14, %s1536_s27  ;;  %679 = vperm.xlu1 %1349, %v378_v22   ;;  %s1448_s27 = scalar_lea.vmem %s1447_s26, 32 }
 0x183   : > { %p1450_p11 = scmp.lt.s32.totalorder %s1448_s27, %s1442_s24 }
 0x185   : > { %p1451_p3 = por %p1450_p11, %p1449_p8 }
 0x187   : > { %p1452_p7 = pnand %p1451_p3, %p1445_p4 }
 0x1c4   : > { %v553_v23 = vpop.permute.xlu0 %552  ;;  %v544_v24 = vpop.permute.xlu1 %543 }
 0x1c8   : > { %v578_v25 = vpop.permute.xlu0 %577  ;;  %v562_v26 = vpop.permute.xlu1 %561 }
 0x1cc   : > { %v601_v27 = vpop.permute.xlu0 %600  ;;  %v569_v28 = vpop.permute.xlu1 %568 }
 0x1d0   : > { %v594_v29 = vpop.permute.xlu1 %593  ;;  %v622_v30 = vpop.permute.xlu0 %621 }
 0x1d4   : > { %v585_v31 = vpop.permute.xlu1 %584  ;;  %v1807_v32 = vpop.permute.xlu0 %643 }
 0x1d8   : > { %v1316_v33 = vpop.permute.xlu0 %1315  ;;  %v610_v34 = vpop.permute.xlu1 %609 }
 0x1d9   : > { %v1318_v35 = vunpack.i.h.bf16 %v1316_v33  ;;  %v1317_v36 = vunpack.i.l.bf16 %v1316_v33 }
 0x1db   : > { %v556_v41 = vsel %vm554_vm3, %v1318_v35, %v553_v23  ;;  %v560_v42 = vsel %vm554_vm3, %v544_v24, %v1317_v36  ;;  %v555_v45 = vsel %vm554_vm3, %v1317_v36, %v1318_v35  ;;  %v380_v36 = vld [vmem:[%s1917_s6] sm:$0xff] }
 0x1dc   : > { %v1321_v37 = vpop.permute.xlu0 %1320  ;;  %v627_v38 = vpop.permute.xlu1 %626  ;;  %832 = vperm.xlu0 %1350, %v380_v36  }
 0x1dd   : > { %v1323_v39 = vunpack.i.h.bf16 %v1321_v37  ;;  %v1322_v40 = vunpack.i.l.bf16 %v1321_v37 }
 0x1df   : > { %v572_v43 = vsel %vm570_vm4, %v1323_v39, %v569_v28  ;;  %v576_v44 = vsel %vm570_vm4, %v562_v26, %v1322_v40  ;;  %v571_v46 = vsel %vm570_vm4, %v1322_v40, %v1323_v39 }
 0x1e0   : > { %v1198_v47 = vpack.c.bf16 %v576_v44, %v560_v42  ;;  %v1213_v48 = vpack.c.bf16 %v572_v43, %v556_v41  ;;  %v1326_v49 = vpop.permute.xlu0 %1325  ;;  %v1331_v50 = vpop.permute.xlu1 %1330  ;;  %v1196_v51 = vpack.c.bf16 %v571_v46, %v555_v45 }
 0x1e1   : > { %v1328_v52 = vunpack.i.h.bf16 %v1326_v49  ;;  %v1327_v53 = vunpack.i.l.bf16 %v1326_v49  ;;  %v1333_v54 = vunpack.i.h.bf16 %v1331_v50  ;;  %v1332_v55 = vunpack.i.l.bf16 %v1331_v50 }
 0x1e2   : > { %1197 = vmatprep.subr.bf16.mxu0 %v1196_v51  ;;  %1214 = vmatpush3.bf16.msra.mxu1 %v1213_v48  ;;  %v379_v48 = vld [vmem:[#allocation7] sm:$0xff] }
 0x1e3   : > { %v588_v56 = vsel %vm586_vm5, %v1328_v52, %v585_v31  ;;  %v592_v57 = vsel %vm586_vm5, %v578_v25, %v1327_v53  ;;  %v604_v58 = vsel %vm602_vm6, %v1333_v54, %v601_v27  ;;  %v608_v59 = vsel %vm602_vm6, %v594_v29, %v1332_v55  ;;  %1199 = vmatpush1.bf16.msra.mxu0 %v1198_v47 }
 0x1e4   : > { %v1216_v60 = vpack.c.bf16 %v604_v58, %v588_v56  ;;  %v1202_v61 = vpack.c.bf16 %v608_v59, %v592_v57  ;;  %v1336_v62 = vpop.permute.xlu0 %1335  ;;  %v639_v63 = vpop.permute.xlu1 %638  ;;  %1215 = vmatprep.subr.bf16.mxu1 %v1529_v18  ;;  %v587_v1 = vsel %vm586_vm5, %v1327_v53, %v1328_v52  ;;  %v603_v2 = vsel %vm602_vm6, %v1332_v55, %v1333_v54  ;;  %v1145_v55 = vld [vmem:[%s1918_s7 + $0x18] sm:$0xff]  ;;  %v985_v57 = vld [vmem:[%s1918_s7 + $0x10] sm:$0xff]  ;;  %v1147_v58 = vld [vmem:[%s1918_s7 + $0x28] sm:$0xff] }
 0x1e5   : > { %v1338_v3 = vunpack.i.h.bf16 %v1336_v62  ;;  %v1337_v4 = vunpack.i.l.bf16 %v1336_v62  ;;  %v1200_v5 = vpack.c.bf16 %v603_v2, %v587_v1  ;;  %v983_v59 = vld [vmem:[%s1918_s7] sm:$0xff] }
 0x1e6   : > { %1217 = vmatpush3.bf16.msra.mxu1 %v1216_v60  ;;  %v1146_v62 = vld [vmem:[%s1918_s7 + $0x20] sm:$0xff] }
 0x1e7   : > { %v625_v6 = vsel %vm624_vm8, %v1338_v3, %v622_v30  ;;  %v616_v7 = vsel %vm615_vm7, %v610_v34, %v1337_v4  ;;  %1201 = vmatprep.subr.bf16.mxu0 %v1200_v5  ;;  %1218 = vmatprep.subr.bf16.mxu1 %v1529_v18  ;;  %v617_v8 = vsel %vm615_vm7, %v1337_v4, %v1338_v3 }
 0x1e8   : > { %v1219_v10 = vpack.c.bf16 %v625_v6, %v1775_v9  ;;  %v1206_v11 = vpack.c.bf16 %v616_v7, %v1781_v14  ;;  %1203 = vmatpush1.bf16.msra.mxu0 %v1202_v61  ;;  %v1341_v12 = vpop.permute.xlu0 %1340  ;;  %v1346_v13 = vpop.permute.xlu1 %1345  ;;  %v1204_v15 = vpack.c.bf16 %v617_v8, %v1787_v17  ;;  %v984_v61 = vld [vmem:[%s1918_s7 + $0x8] sm:$0xff] }
 0x1e9   : > { %v1343_v16 = vunpack.i.h.bf16 %v1341_v12  ;;  %v1342_v19 = vunpack.i.l.bf16 %v1341_v12  ;;  %v1348_v20 = vunpack.i.h.bf16 %v1346_v13  ;;  %v1347_v21 = vunpack.i.l.bf16 %v1346_v13 }
 0x1ea   : > { %1205 = vmatprep.subr.bf16.mxu0 %v1204_v15  ;;  %1220 = vmatpush3.bf16.msra.mxu1 %v1219_v10 }
 0x1eb   : > { %v633_v22 = vsel %vm632_vm9, %v627_v38, %v1342_v19  ;;  %v650_v9 = vsel %vm649_vm10, %v1807_v32, %v1347_v21  ;;  %v634_v14 = vsel %vm632_vm9, %v1342_v19, %v1343_v16  ;;  %1221 = vmatprep.subr.bf16.mxu1 %v1529_v18  ;;  %v651_v25 = vsel %vm649_vm10, %v1347_v21, %v1348_v20  ;;  %v377_v18 = vld [vmem:[%s1914_s3] sm:$0xff] }
 0x1ec   : > { %v1210_v23 = vpack.c.bf16 %v650_v9, %v633_v22  ;;  %1207 = vmatpush1.bf16.msra.mxu0 %v1206_v11  ;;  %v656_v17 = vpop.permute.xlu0 %655  ;;  %v663_v24 = vpop.permute.xlu1 %662  ;;  %v642_v26 = vsel %vm641_vm11, %v1343_v16, %v639_v63  ;;  %v1208_v28 = vpack.c.bf16 %v651_v25, %v634_v14 }
 0x1ed   : > { %v659_v27 = vsel %vm658_vm12, %v1348_v20, %v656_v17 }
 0x1ee   : > { %v1222_v29 = vpack.c.bf16 %v659_v27, %v642_v26  ;;  %1209 = vmatprep.subr.bf16.mxu0 %v1208_v28  ;;  %v381_v28 = vld [vmem:[%s1919_s8] sm:$0x1] }
 0x1f0   : > { %1211 = vmatpush1.bf16.msra.mxu0 %v1210_v23  ;;  %v665_v30 = vpop.permute.xlu0 %664  ;;  %v661_v31 = vpop.permute.xlu1 %660  ;;  %1223 = vmatpush3.bf16.msra.mxu1 %v1222_v29 }
 0x1f1   : > { %v667_v32 = vsel %vm666_vm13, %v661_v31, %v663_v24  ;;  %v668_v33 = vsel %vm666_vm13, %v663_v24, %v665_v30  ;;  %1186 = vmatprep.subr.mxu1 %v1517_v0 }
 0x1f2   : > { %702 = vmatprep.subr.mxu0 %v668_v33 }
 0x1f4   : > { %703 = vmatpush1.msra.mxu0 %v667_v32  ;;  %v673_v34 = vpop.permute.xlu0 %672 }
 0x1f5   : > { %v676_v35 = vsel %vm675_vm14, %v665_v30, %v673_v34  ;;  %1141 = vmatmul.mubr.msk.f32.vlgmr.msra.gmra.mrb[2].mxu0 %vm682_vm15, %v377_v18 }
 0x1f6   : > { %1187 = vmatpush3.msra.mxu1 %v676_v35  ;;  %903 = vmatprep.mubr.f32.mxu0 %v1517_v0 }
 0x1f7   : > { %1189 = vmatmul.mubr.msk.f32.vlgmr.msra.gmra.mrb[2].mxu1 %vm682_vm15, %v377_v18  ;;  %1191 = vmatprep.subr.mxu1 %v1517_v0 }
 0x1f8   : > { %1193 = vmatprep.mubr.msk.f32.mxu1 %vm1518_vm0, %v1517_v0  ;;  %vm990_vm0 = vcmask 556032  }
 0x201   : > { %v680_v37 = vpop.permute.xlu1 %679 }
 0x25b   : > { %v833_v0 = vpop.permute.xlu0 %832 }
 0x2c8   : > { %v752_v38 = vpop.f32.mrb[2].mxu0 }
 0x2c9   : > { %v753_v39 = vadd.f32 %v752_v38, %v680_v37  ;;  %v754_v40 = vpop.f32.mrb[3].mxu0 }
 0x2ca   : > { %v755_v41 = vadd.f32 %v754_v40, %v680_v37  ;;  %v823_v42 = vpop.f32.mrb[2].mxu1 }
 0x2cb   : > { %v824_v43 = vadd.f32 %v823_v42, %v680_v37  ;;  %v1190_v44 = vpop.f32.mrb[3].mxu1  ;;  %v827_v46 = vmax.f32 %v753_v39, 0.0 }
 0x2cc   : > { %v828_v45 = vmax.f32 %v755_v41, 0.0 }
 0x2cd   : > { %v829_v47 = vmax.f32 %v824_v43, 0.0 }
 0x2ce   : > { %839 = vmatprep.subr.mxu0 %v828_v45 }
 0x2cf   : > { %840 = vmatpush1.msra.mxu0 %v827_v46  ;;  %1192 = vmatpush3.msra.mxu1 %v829_v47 }
 0x2d0   : > { %1143 = vmatmul.mubr.msk.f32.vlgmr.msra.gmra.mrb[4].mxu0 %vm835_vm1, %v379_v48  ;;  %1194 = vmatmul.mubr.msk.f32.vlgmr.msra.gmra.mrb[4].mxu1 %vm835_vm1, %v379_v48 }
 0x3a3   : > { %v905_v49 = vpop.f32.mrb[4].mxu0  ;;  %v976_v50 = vpop.f32.mrb[4].mxu1 }
 0x3a4   : > { %v906_v51 = vadd.f32 %v905_v49, %v833_v0  ;;  %v907_v52 = vpop.f32.mrb[5].mxu0  ;;  %v977_v53 = vadd.f32 %v976_v50, %v833_v0  ;;  %v1195_v54 = vpop.f32.mrb[5].mxu1 }
 0x3a5   : > { %v908_v56 = vadd.f32 %v907_v52, %v833_v0 }
 0x3a6   : > { %v980_v60 = vmax.f32 %v906_v51, 0.0  ;;  %v982_v63 = vmax.f32 %v977_v53, 0.0 }
 0x3a7   : > { %v981_v1 = vmax.f32 %v908_v56, 0.0 }
 0x3a8   : > { %v988_v2 = vmul.f32 %v985_v57, %v982_v63  ;;  %v1007_v3 = vmul.f32 %v1147_v58, %v982_v63  ;;  %v1005_v4 = vmul.f32 %v1145_v55, %v980_v60  ;;  %v986_v5 = vmul.f32 %v983_v59, %v980_v60 }
 0x3a9   : > { %v987_v6 = vmul.f32 %v984_v61, %v981_v1  ;;  %v1006_v7 = vmul.f32 %v1146_v62, %v981_v1 }
 0x3aa   : > { %v1009_v8 = vsel %vm990_vm0, %v1007_v3, 0.0  ;;  %v991_v10 = vsel %vm990_vm0, %v988_v2, 0.0 }
 0x3ab   : > { %v1008_v11 = vadd.f32 %v1006_v7, %v1005_v4  ;;  %v989_v12 = vadd.f32 %v987_v6, %v986_v5 }
 0x3ad   : > { %v1010_v13 = vadd.f32 %v1009_v8, %v1008_v11  ;;  %v992_v15 = vadd.f32 %v991_v10, %v989_v12 }
 0x3af   : > { %1011 = vadd.xlane.f32.xlu0 %v1010_v13  ;;  %993 = vadd.xlane.f32.xlu1 %v992_v15 }
 0x43c   : > { %v1012_v16 = vpop.xlane.xlu0 %1011  ;;  %v994_v19 = vpop.xlane.xlu1 %993 }
 0x43d   : > { %v1013_v20 = vrot.slane %v1012_v16, 4  ;;  %v995_v21 = vrot.slane %v994_v19, 4 }
 0x43f   : > { %v1014_v22 = vadd.f32 %v1013_v20, %v1012_v16  ;;  %v996_v9 = vadd.f32 %v995_v21, %v994_v19 }
 0x441   : > { %v1015_v14 = vrot.slane %v1014_v22, 2  ;;  %v997_v23 = vrot.slane %v996_v9, 2 }
 0x443   : > { %v1016_v17 = vadd.f32 %v1015_v14, %v1014_v22  ;;  %v998_v24 = vadd.f32 %v997_v23, %v996_v9 }
 0x445   : > { %v1017_v25 = vrot.slane %v1016_v17, 1  ;;  %v999_v26 = vrot.slane %v998_v24, 1 }
 0x447   : > { %v1018_v27 = vadd.f32 %v1017_v25, %v1016_v17  ;;  %v1000_v29 = vadd.f32 %v999_v26, %v998_v24 }
 0x449   : > { %v1019_v30 = vsel %vm602_vm6, %v1000_v29, %v1018_v27 }
 0x44a   : > { %v1020_v31 = vadd.f32 %v1019_v30, %v381_v28 }
 0x44c   : > { %v1021_v32 = vsub.f32 0.0, %v1020_v31 }
 0x44e   : > { %v1022_v33 = vmul.f32 1.442695, %v1021_v32 }
 0x450   : > { %1352 = vpow2.f32 %v1022_v33 }
 0x45a   : > { %v1353_v18 = vpop.eup %1352 }
 0x45b   : > { %v1024_v34 = vadd.f32 1.0, %v1353_v18 }
 0x45d   : > { %1354 = vrcp.f32 %v1024_v34 }
 0x467   : > { %v1355_v35 = vpop.eup %1354 }
 0x468   : > { %1028 = vst.msk [vmem:[%s372_s22] sm:$0x1] %vm1027_vm2, %v1355_v35 }
 0x469   : > { %1455 = shalt.err (!%p1452_p7)
}
 0x46a   : > { %s1456_s2 = scalar_lea.hbm %s1867_s17, 16  ;;  %s1460_s14 = scalar_lea.hbm %s1920_s9, 32 }
 0x46b   : > { %p1457_p10 = scmp.ne.s32.totalorder %s1867_s17, %s1456_s2  ;;  %p1461_p0 = scmp.lt.u32.totalorder %s1867_s17, %s1920_s9 }
 0x46c   : > { %p1462_p9 = scmp.lt.u32.totalorder %s1460_s14, %s1456_s2  ;;  %p1464_p2 = scmp.lt.u32.totalorder %s1456_s2, %s1867_s17 }
 0x46d   : > { %p1458_p13 = pnand %p1457_p10, %p1707_p6 }
 0x46e   : > { %p1463_p12 = por %p1462_p9, %p1461_p0 }
 0x46f   : > { %p1459_p5 = pneg %p1458_p13 }
 0x470   : > { %p1465_p1 = por %p1464_p2, %p1463_p12 }
 0x472   : > { %p1466_p4 = pnand %p1465_p1, %p1459_p5 }
 0x474   : > { %1469 = shalt.err (!%p1466_p4)
}
 0x475   : > { %1237 = dma.vmem_to_hbm [thread:$0]  (%p1707_p6), %s1869_s21, 16, %s1867_s17, %s1030_s20  }
 0x476 PF: > { %s1054_s22 = sand.u32 1, %s1500_s30   ;;  %p1941_p8 = scmp.ne.s32.totalorder %s1927_s16, 0 }
 0x477   : > { %p1942_p11 = scmp.ge.s32.totalorder %s1512_s12, 2  ;;  %s1055_s18 = scalar_lea.sflag [#allocation4], %s1054_s22 }
 0x479   : > { %p1251_p3 = pnand %p1942_p11, %p1941_p8 }
 0x47b   : > { %1495 = dma.done.wait (!%p1251_p3), %s1055_s18, 16  }
 0x47c   : > { %1497 = vsyncadd (!%p1251_p3), %s1055_s18, 4294967280  ;;  %s1943_s15 = sld [smem:[#allocation12_spill]]  ;;  %p23_p7 = scmp.ge.s32.totalorder %s1644_s23, 4  }
 0x47d   : > { %s1944_s30 = smov %s1504_s10  ;;  %s1945_s10 = smov %s1508_s11 }
 0x47e   : > { %s1947_s12 = smov %s1644_s23  ;;  %25 = sbr.rel (!%p23_p7) target bundleno = 9 (0x9), region = 110 }
 0x482   : > { %s1946_s11 = smov %s1943_s15 }
 0x485   :  { %1059 = vsyncpa [#allocation3], 1 }
 0x486   :  { %1061 = vsyncpa [#allocation3 + $0x1], 1 }
 0x487   :  { %1062 = vsyncpa [#allocation6], 1 }
 0x488   :  { %1063 = vsyncpa [#allocation4], 1 }
 0x489   :  { %1065 = vsyncpa [#allocation4 + $0x1], 1 }

</bundles_post_ra>
